<compile_context>
chip_gen: v7x
topology: tpu7x:2x2x1
jax: 0.10.0
libtpu: 0.0.40
codegen_flags: <defaults>
</compile_context>

<pallas_src>
import functools

import jax
import jax.numpy as jnp
from jax.experimental import pallas as pl
from jax.experimental.pallas import tpu as pltpu

INPUT_SIZE = 8
HIDDEN_SIZE = 8
OUTPUT_SIZE = 4

SAMPLES_PER_ROW = 16                         # 16 samples * 8 features = 128 lanes
LANES_IN = SAMPLES_PER_ROW * INPUT_SIZE      # 128
LANES_HID = SAMPLES_PER_ROW * HIDDEN_SIZE    # 128
LANES_OUT = SAMPLES_PER_ROW * OUTPUT_SIZE    # 64

_MIN_SPLIT_ROWS = 1024                       # >= 32K samples -> >= 2 grid blocks (v7x megacore)
_VMEM_BUDGET = 32 * 1024 * 1024              # safe scoped-VMEM request on v5e/v6e/v7x
_VMEM_HEADROOM = 2 * 1024 * 1024
# Resident packed weights (w1_big, b1_big, w2_cat, b2_cat, bcast), x2 buffers.
_CONST_VMEM = 2 * 4 * (LANES_IN * LANES_HID + LANES_HID +
                       LANES_HID * 2 * LANES_OUT + 2 * LANES_OUT +
                       SAMPLES_PER_ROW * LANES_OUT)


def dqn_kernel(x_ref, w1_ref, b1_ref, w2_ref, b2_ref, bc_ref, o_ref):
    """One batch tile, everything lane-packed (16 samples per sublane row).

    x_ref : (rows, 128)  lane 8*m + j        <-> sample m, input feature j
    w1_ref: (128, 128)   kron(I16, w1.T)      -> lin1 per 8-lane sample group
    b1_ref: (1, 128)     b1 tiled per sample group
    w2_ref: (128, 128)   [kron(I16, w2.T) | feature-blocked copy]
    b2_ref: (1, 128)     matching biases for both layouts
    bc_ref: (16, 64)     0/1 matrix: lane m -> lanes 4*m + k (exact broadcast)
    o_ref : (rows, 64)   lane 4*m + k        <-> sample m, action k (log-prob)
    """
    # Upcast immediately after load (bf16 I/O path); all math below is f32.
    x = x_ref[...].astype(jnp.float32)

    # lin1 + ReLU for all 16 samples of every row in a single MXU pass.
    # TODO(synk): if the bundle ever shows the MXU result path binding on
    # v5e/v6e, drive it weight-stationary (pltpu.matmul_push_rhs once per tile).
    h = jnp.dot(x, w1_ref[...], preferred_element_type=jnp.float32) + b1_ref[...]
    h = jnp.maximum(h, 0.0)

    # lin2, two lane layouts from one matmul:
    #   lanes [0, 64)   : z interleaved     (lane 4*m + k)      -> final output
    #   lanes [64, 128) : z feature-blocked (lane 64 + 16*k + m) -> reductions
    zz = jnp.dot(h, w2_ref[...], preferred_element_type=jnp.float32) + b2_ref[...]
    z_int = zz[:, :LANES_OUT]

    # Per-sample max / logsumexp over the OUTPUT_SIZE actions: elementwise ops
    # over contiguous 16-lane slabs of the feature-blocked copy (VPU + EUP).
    slabs = [zz[:, LANES_OUT + k * SAMPLES_PER_ROW:
                   LANES_OUT + (k + 1) * SAMPLES_PER_ROW]
             for k in range(OUTPUT_SIZE)]
    zmax = functools.reduce(jnp.maximum, slabs)                       # (rows, 16)
    ssum = functools.reduce(jnp.add, [jnp.exp(s - zmax) for s in slabs])
    lse = zmax + jnp.log(ssum)                                        # (rows, 16)

    # Broadcast the per-sample logsumexp back to interleaved lanes with a tiny
    # exact 0/1 matmul, then subtract: stable log_softmax.
    lse_int = jnp.dot(lse, bc_ref[...], preferred_element_type=jnp.float32)
    o_ref[...] = (z_int - lse_int).astype(o_ref.dtype)


def _pack_params(w1, b1, w2, b2):
    """Precompute lane-packed weights (tiny one-time cost per parameter set)."""
    f32 = jnp.float32
    w1 = w1.astype(f32)
    b1 = b1.astype(f32)
    w2 = w2.astype(f32)
    b2 = b2.astype(f32)
    eye = jnp.eye(SAMPLES_PER_ROW, dtype=f32)

    # lin1 applied independently to every 8-lane sample group.
    w1_big = jnp.kron(eye, w1.T)                                  # (128, 128)
    b1_big = jnp.tile(b1, SAMPLES_PER_ROW)[None, :]               # (1, 128)

    # lin2 -> interleaved layout: lane 8m+j -> lane 4m+k.
    w2_int = jnp.kron(eye, w2.T)                                  # (128, 64)
    b2_int = jnp.tile(b2, SAMPLES_PER_ROW)                        # (64,)

    # lin2 -> feature-blocked layout: lane 8m+j -> lane 16k+m.
    m = jnp.arange(SAMPLES_PER_ROW)
    k = jnp.arange(OUTPUT_SIZE)
    j = jnp.arange(HIDDEN_SIZE)
    rows = HIDDEN_SIZE * m[:, None, None] + j[None, None, :]      # (16, 1, 8)
    cols = SAMPLES_PER_ROW * k[None, :, None] + m[:, None, None]  # (16, 4, 1)
    w2_blk = jnp.zeros((LANES_HID, LANES_OUT), f32).at[rows, cols].set(w2[None, :, :])
    b2_blk = jnp.repeat(b2, SAMPLES_PER_ROW)                      # (64,)

    w2_cat = jnp.concatenate([w2_int, w2_blk], axis=1)            # (128, 128)
    b2_cat = jnp.concatenate([b2_int, b2_blk])[None, :]           # (1, 128)

    # 0/1 broadcast matrix: per-sample scalar (lane m) -> lanes 4m + k.
    bcast = jnp.kron(eye, jnp.ones((1, OUTPUT_SIZE), f32))        # (16, 64)
    return w1_big, b1_big, w2_cat, b2_cat, bcast


def _round_up(value, multiple):
    return ((value + multiple - 1) // multiple) * multiple


def _choose_tile_rows(rows_total, block_b, bytes_per_row):
    # Tiny or oddly-shaped batches: a single full-array block is always legal
    # (block dims equal the full array dims).
    if rows_total <= 16 or rows_total % 8 != 0:
        return rows_total
    tile = max(16, min(block_b // SAMPLES_PER_ROW, rows_total))
    # v7x megacore: once the batch is big enough, keep >= 2 blocks on the
    # "parallel" grid axis so both TensorCores get work.
    if rows_total >= 2 * _MIN_SPLIT_ROWS:
        tile = min(tile, _round_up((rows_total + 1) // 2, 16))
    # Clamp by the VMEM footprint model (double-buffered I/O + f32 temporaries).
    max_rows_vmem = (_VMEM_BUDGET - _CONST_VMEM - _VMEM_HEADROOM) // bytes_per_row
    tile = min(tile, max(16, max_rows_vmem))
    # Multiple of 16 rows keeps both the f32 (8,128) and bf16 (16,128) sublane
    # tiling constraints satisfied for interior blocks; edge blocks are padded.
    return max(16, (tile // 16) * 16)


@functools.partial(jax.jit, static_argnames=("block_b", "out_dtype"))
def dqn_forward(x, w1, b1, w2, b2, *, block_b=65536, out_dtype=None):
    """DQN forward pass.

    x : (B, INPUT_SIZE) f32 or bf16, PyTorch row-major layout.
    w1: (HIDDEN_SIZE, INPUT_SIZE), b1: (HIDDEN_SIZE,)   (PyTorch nn.Linear layout)
    w2: (OUTPUT_SIZE, HIDDEN_SIZE), b2: (OUTPUT_SIZE,)
    Returns (B, OUTPUT_SIZE) log-probabilities in `out_dtype` (default x.dtype).
    """
    B, in_dim = x.shape
    assert in_dim == INPUT_SIZE
    in_dtype = jnp.dtype(x.dtype)
    out_dtype = jnp.dtype(in_dtype if out_dtype is None else out_dtype)

    # Pad the batch to a multiple of 16 so (B,8) <-> (B/16,128) is a pure
    # bitcast (a no-op for the usual power-of-two batch sizes).
    b_padded = _round_up(max(B, SAMPLES_PER_ROW), SAMPLES_PER_ROW)
    if b_padded != B:
        x = jnp.pad(x, ((0, b_padded - B), (0, 0)))
    rows_total = b_padded // SAMPLES_PER_ROW

    # Lane-dense views of the SAME buffers -- no transposes anywhere.
    x_pack = x.reshape(rows_total, LANES_IN)
    w1_big, b1_big, w2_cat, b2_cat, bcast = _pack_params(w1, b1, w2, b2)

    # VMEM model: double-buffered in/out tiles + the f32 temporaries (x, h, zz,
    # z_int, lse_int, pre-cast out) the kernel materializes at tile width.
    bytes_per_row = (2 * (LANES_IN * in_dtype.itemsize + LANES_OUT * out_dtype.itemsize)
                     + 4 * (3 * LANES_IN + 3 * LANES_OUT))
    tile_rows = _choose_tile_rows(rows_total, block_b, bytes_per_row)
    grid = (pl.cdiv(rows_total, tile_rows),)
    vmem_limit = int(min(_VMEM_BUDGET,
                         tile_rows * bytes_per_row + _CONST_VMEM + _VMEM_HEADROOM))

    out_pack = pl.pallas_call(
        dqn_kernel,
        out_shape=jax.ShapeDtypeStruct((rows_total, LANES_OUT), out_dtype),
        grid_spec=pltpu.PrefetchScalarGridSpec(
            num_scalar_prefetch=0,
            grid=grid,
            in_specs=[
                # x tile marches down the packed batch rows.
                pl.BlockSpec((tile_rows, LANES_IN), lambda i: (i, 0)),
                # Packed weights: constant index_map -> fetched once, resident.
                pl.BlockSpec((LANES_IN, LANES_HID), lambda i: (0, 0)),
                pl.BlockSpec((1, LANES_HID), lambda i: (0, 0)),
                pl.BlockSpec((LANES_HID, 2 * LANES_OUT), lambda i: (0, 0)),
                pl.BlockSpec((1, 2 * LANES_OUT), lambda i: (0, 0)),
                pl.BlockSpec((SAMPLES_PER_ROW, LANES_OUT), lambda i: (0, 0)),
            ],
            out_specs=pl.BlockSpec((tile_rows, LANES_OUT), lambda i: (i, 0)),
        ),
        compiler_params=pltpu.CompilerParams(
            dimension_semantics=("parallel",),
            vmem_limit_bytes=vmem_limit,
        ),
    )(x_pack, w1_big, b1_big, w2_cat, b2_cat, bcast)

    # Free bitcast back to the PyTorch-facing (B, OUTPUT_SIZE) layout.
    out = out_pack.reshape(b_padded, OUTPUT_SIZE)
    return out if b_padded == B else out[:B]


def init_params(key):
    """Deterministic init mimicking PyTorch nn.Linear default:
    uniform(-1/sqrt(fan_in), 1/sqrt(fan_in)), weights in (out, in) layout."""
    k1, k2, k3, k4 = jax.random.split(key, 4)
    bound1 = 1.0 / (INPUT_SIZE ** 0.5)
    bound2 = 1.0 / (HIDDEN_SIZE ** 0.5)
    w1 = jax.random.uniform(k1, (HIDDEN_SIZE, INPUT_SIZE), jnp.float32,
                            -bound1, bound1)
    b1 = jax.random.uniform(k2, (HIDDEN_SIZE,), jnp.float32, -bound1, bound1)
    w2 = jax.random.uniform(k3, (OUTPUT_SIZE, HIDDEN_SIZE), jnp.float32,
                            -bound2, bound2)
    b2 = jax.random.uniform(k4, (OUTPUT_SIZE,), jnp.float32, -bound2, bound2)
    return w1, b1, w2, b2


def reference_forward(x, w1, b1, w2, b2):
    h = jnp.maximum(x @ w1.T + b1, 0.0)
    z = h @ w2.T + b2
    return jax.nn.log_softmax(z, axis=-1)


if __name__ == "__main__":
    key = jax.random.PRNGKey(0)
    kx1, kx2, kx3, kp = jax.random.split(key, 4)
    w1, b1, w2, b2 = init_params(kp)

    # 1) Tiny batch: single block, batch internally padded 8 -> 16.
    x1 = jax.random.normal(kx1, (8, INPUT_SIZE), jnp.float32)
    o1 = jax.block_until_ready(dqn_forward(x1, w1, b1, w2, b2))
    r1 = reference_forward(x1, w1, b1, w2, b2)
    assert o1.shape == (8, OUTPUT_SIZE)
    assert jnp.allclose(o1, r1, atol=2e-5, rtol=2e-5)

    # 2) Multi-block grid with a ragged edge block (640 samples, 256-sample
    #    tiles): exercises the batch grid, resident weights and edge handling.
    x2 = jax.random.normal(kx2, (640, INPUT_SIZE), jnp.float32)
    o2 = jax.block_until_ready(dqn_forward(x2, w1, b1, w2, b2, block_b=256))
    r2 = reference_forward(x2, w1, b1, w2, b2)
    assert o2.shape == (640, OUTPUT_SIZE)
    assert jnp.allclose(o2, r2, atol=2e-5, rtol=2e-5)

    # 3) bf16 I/O path (f32 math inside the kernel; only I/O is quantized).
    x3 = jax.random.normal(kx3, (2048, INPUT_SIZE), jnp.float32).astype(jnp.bfloat16)
    o3 = jax.block_until_ready(dqn_forward(x3, w1, b1, w2, b2))
    r3 = reference_forward(x3.astype(jnp.float32), w1, b1, w2, b2)
    assert o3.shape == (2048, OUTPUT_SIZE) and o3.dtype == jnp.bfloat16
    assert jnp.allclose(o3.astype(jnp.float32), r3, atol=6e-2, rtol=6e-2)

    print("KERNEL_OK")
</pallas_src>

<mosaic_0001>
module attributes {stable_mosaic.version = 11 : i64} {
  func.func @dqn_kernel(%arg0: i32, %arg1: memref<1x128xf32, #tpu.memory_space<vmem>>, %arg2: memref<128x128xf32, #tpu.memory_space<vmem>>, %arg3: memref<1x128xf32, #tpu.memory_space<vmem>>, %arg4: memref<128x128xf32, #tpu.memory_space<vmem>>, %arg5: memref<1x128xf32, #tpu.memory_space<vmem>>, %arg6: memref<16x64xf32, #tpu.memory_space<vmem>>, %arg7: memref<1x64xf32, #tpu.memory_space<vmem>>) attributes {dimension_semantics = [#tpu.dimension_semantics<parallel>], iteration_bounds = array<i64: 1>, scalar_prefetch = 0 : i64, scratch_operands = 0 : i64, tpu.core_type = #tpu.core_type<tc>, window_params = [{transform_indices = @transform_0, window_bounds = array<i64: 1, 128>}, {pipeline_mode = #tpu.pipeline_mode<synchronous>, transform_indices = @transform_1, window_bounds = array<i64: 128, 128>}, {pipeline_mode = #tpu.pipeline_mode<synchronous>, transform_indices = @transform_2, window_bounds = array<i64: 1, 128>}, {pipeline_mode = #tpu.pipeline_mode<synchronous>, transform_indices = @transform_3, window_bounds = array<i64: 128, 128>}, {pipeline_mode = #tpu.pipeline_mode<synchronous>, transform_indices = @transform_4, window_bounds = array<i64: 1, 128>}, {pipeline_mode = #tpu.pipeline_mode<synchronous>, transform_indices = @transform_5, window_bounds = array<i64: 16, 64>}, {transform_indices = @transform_6, window_bounds = array<i64: 1, 64>}]} {
    %c0 = arith.constant 0 : index
    %c0_0 = arith.constant 0 : index
    %0 = vector.load %arg1[%c0, %c0_0] : memref<1x128xf32, #tpu.memory_space<vmem>>, vector<1x128xf32>
    %c0_1 = arith.constant 0 : index
    %c0_2 = arith.constant 0 : index
    %1 = vector.load %arg2[%c0_1, %c0_2] : memref<128x128xf32, #tpu.memory_space<vmem>>, vector<128x128xf32>
    %cst = arith.constant dense<0.000000e+00> : vector<1x128xf32>
    %2 = tpu.matmul %0, %1, %cst {dimension_numbers = #tpu.dot_dimension_numbers<[1], [0], [0], [1], [0, 0, 1, 1], [], []>} : vector<1x128xf32>, vector<128x128xf32>, vector<1x128xf32> -> vector<1x128xf32>
    %c0_3 = arith.constant 0 : index
    %c0_4 = arith.constant 0 : index
    %3 = vector.load %arg3[%c0_3, %c0_4] : memref<1x128xf32, #tpu.memory_space<vmem>>, vector<1x128xf32>
    %4 = arith.addf %2, %3 : vector<1x128xf32>
    %cst_5 = arith.constant 0.000000e+00 : f32
    %5 = vector.broadcast %cst_5 : f32 to vector<1x128xf32>
    %6 = arith.maximumf %4, %5 : vector<1x128xf32>
    %c0_6 = arith.constant 0 : index
    %c0_7 = arith.constant 0 : index
    %7 = vector.load %arg4[%c0_6, %c0_7] : memref<128x128xf32, #tpu.memory_space<vmem>>, vector<128x128xf32>
    %cst_8 = arith.constant dense<0.000000e+00> : vector<1x128xf32>
    %8 = tpu.matmul %6, %7, %cst_8 {dimension_numbers = #tpu.dot_dimension_numbers<[1], [0], [0], [1], [0, 0, 1, 1], [], []>} : vector<1x128xf32>, vector<128x128xf32>, vector<1x128xf32> -> vector<1x128xf32>
    %c0_9 = arith.constant 0 : index
    %c0_10 = arith.constant 0 : index
    %9 = vector.load %arg5[%c0_9, %c0_10] : memref<1x128xf32, #tpu.memory_space<vmem>>, vector<1x128xf32>
    %10 = arith.addf %8, %9 : vector<1x128xf32>
    %11 = vector.extract_strided_slice %10 {offsets = [0, 0], sizes = [1, 64], strides = [1, 1]} : vector<1x128xf32> to vector<1x64xf32>
    %12 = vector.extract_strided_slice %10 {offsets = [0, 64], sizes = [1, 16], strides = [1, 1]} : vector<1x128xf32> to vector<1x16xf32>
    %13 = vector.extract_strided_slice %10 {offsets = [0, 80], sizes = [1, 16], strides = [1, 1]} : vector<1x128xf32> to vector<1x16xf32>
    %14 = vector.extract_strided_slice %10 {offsets = [0, 96], sizes = [1, 16], strides = [1, 1]} : vector<1x128xf32> to vector<1x16xf32>
    %15 = vector.extract_strided_slice %10 {offsets = [0, 112], sizes = [1, 16], strides = [1, 1]} : vector<1x128xf32> to vector<1x16xf32>
    %16 = arith.maximumf %12, %13 : vector<1x16xf32>
    %17 = arith.maximumf %16, %14 : vector<1x16xf32>
    %18 = arith.maximumf %17, %15 : vector<1x16xf32>
    %19 = arith.subf %12, %18 : vector<1x16xf32>
    %20 = math.exp %19 : vector<1x16xf32>
    %21 = arith.subf %13, %18 : vector<1x16xf32>
    %22 = math.exp %21 : vector<1x16xf32>
    %23 = arith.subf %14, %18 : vector<1x16xf32>
    %24 = math.exp %23 : vector<1x16xf32>
    %25 = arith.subf %15, %18 : vector<1x16xf32>
    %26 = math.exp %25 : vector<1x16xf32>
    %27 = arith.addf %20, %22 : vector<1x16xf32>
    %28 = arith.addf %27, %24 : vector<1x16xf32>
    %29 = arith.addf %28, %26 : vector<1x16xf32>
    %30 = math.log %29 : vector<1x16xf32>
    %31 = arith.addf %18, %30 : vector<1x16xf32>
    %c0_11 = arith.constant 0 : index
    %c0_12 = arith.constant 0 : index
    %32 = vector.load %arg6[%c0_11, %c0_12] : memref<16x64xf32, #tpu.memory_space<vmem>>, vector<16x64xf32>
    %cst_13 = arith.constant dense<0.000000e+00> : vector<1x64xf32>
    %33 = tpu.matmul %31, %32, %cst_13 {dimension_numbers = #tpu.dot_dimension_numbers<[1], [0], [0], [1], [0, 0, 1, 1], [], []>} : vector<1x16xf32>, vector<16x64xf32>, vector<1x64xf32> -> vector<1x64xf32>
    %34 = arith.subf %11, %33 : vector<1x64xf32>
    %c0_14 = arith.constant 0 : index
    %c0_15 = arith.constant 0 : index
    %35 = vector.load %arg7[%c0_14, %c0_15] : memref<1x64xf32, #tpu.memory_space<vmem>>, vector<1x64xf32>
    tpu.vector_store %arg7[%c0_14, %c0_15], %34 {strides = array<i32>} : memref<1x64xf32, #tpu.memory_space<vmem>>, vector<1x64xf32>,
    return
  }
  func.func @transform_0(%arg0: i32) -> (i32, i32) {
    %c0_i32 = arith.constant 0 : i32
    %c0_i32_0 = arith.constant 0 : i32
    return %arg0, %c0_i32 : i32, i32
  }
  func.func @transform_1(%arg0: i32) -> (i32, i32) {
    %c0_i32 = arith.constant 0 : i32
    %c0_i32_0 = arith.constant 0 : i32
    %c0_i32_1 = arith.constant 0 : i32
    return %c0_i32, %c0_i32_0 : i32, i32
  }
  func.func @transform_2(%arg0: i32) -> (i32, i32) {
    %c0_i32 = arith.constant 0 : i32
    %c0_i32_0 = arith.constant 0 : i32
    %c0_i32_1 = arith.constant 0 : i32
    return %c0_i32, %c0_i32_0 : i32, i32
  }
  func.func @transform_3(%arg0: i32) -> (i32, i32) {
    %c0_i32 = arith.constant 0 : i32
    %c0_i32_0 = arith.constant 0 : i32
    %c0_i32_1 = arith.constant 0 : i32
    return %c0_i32, %c0_i32_0 : i32, i32
  }
  func.func @transform_4(%arg0: i32) -> (i32, i32) {
    %c0_i32 = arith.constant 0 : i32
    %c0_i32_0 = arith.constant 0 : i32
    %c0_i32_1 = arith.constant 0 : i32
    return %c0_i32, %c0_i32_0 : i32, i32
  }
  func.func @transform_5(%arg0: i32) -> (i32, i32) {
    %c0_i32 = arith.constant 0 : i32
    %c0_i32_0 = arith.constant 0 : i32
    %c0_i32_1 = arith.constant 0 : i32
    return %c0_i32, %c0_i32_0 : i32, i32
  }
  func.func @transform_6(%arg0: i32) -> (i32, i32) {
    %c0_i32 = arith.constant 0 : i32
    %c0_i32_0 = arith.constant 0 : i32
    return %arg0, %c0_i32 : i32, i32
  }
}

</mosaic_0001>

<bundles_post_ra>
// kernel: tile.13
= control target key start
LH: loop header
LB: loop body
LE: loop exit
PB: predicated region body
PF: predicated region fallthrough
CT: control target
= control target key end

     0   :  { %s28_s0 = inlined_call_operand.vmem [shape: f32[8], index: 0, kind: input, shape index: {}]   ;;  %s29_s1 = inlined_call_operand.vmem [shape: f32[16,8], index: 1, kind: output, shape index: {}]  }
   0x1   :  { %v4_v0 = vld [vmem:[%s28_s0] ss:$0 sm:$0xff] }
   0x2   :  { %5 = vst [vmem:[%s29_s1] sm:$0xff] %v4_v0  ;;  %8 = vst [vmem:[%s29_s1 + $0x8] sm:$0xff] %v4_v0 }

// kernel: tile.18
= control target key start
LH: loop header
LB: loop body
LE: loop exit
PB: predicated region body
PF: predicated region fallthrough
CT: control target
= control target key end

     0   :  { %s28_s0 = inlined_call_operand.vmem [shape: f32[4], index: 0, kind: input, shape index: {}]   ;;  %s29_s1 = inlined_call_operand.vmem [shape: f32[16,4], index: 1, kind: output, shape index: {}]  }
   0x1   :  { %v4_v0 = vld [vmem:[%s28_s0] ss:$0 sm:$0xff] }
   0x2   :  { %5 = vst [vmem:[%s29_s1] sm:$0xff] %v4_v0  ;;  %8 = vst [vmem:[%s29_s1 + $0x8] sm:$0xff] %v4_v0 }

// kernel: tile.19
= control target key start
LH: loop header
LB: loop body
LE: loop exit
PB: predicated region body
PF: predicated region fallthrough
CT: control target
= control target key end

     0   :  { %s131_s10 = smov 60   ;;  %s132_s11 = smov 52   ;;  %vm3_vm0 = vcmask 31744   ;;  %vm9_vm1 = vcmask 523744   ;;  %vm15_vm2 = vcmask 490944   ;;  %vm21_vm3 = vcmask 458144   ;;  %s207_s0 = inlined_call_operand.vmem [shape: f32[16,4], index: 0, kind: input, shape index: {}]   ;;  %s208_s1 = inlined_call_operand.vmem [shape: f32[64], index: 1, kind: output, shape index: {}]  }
   0x1   :  { %v101_v0 = vld [vmem:[%s207_s0 + $0xf] sm:$0x1]   ;;  %v103_v1 = vld [vmem:[%s207_s0 + $0xd] sm:$0x1]   ;;  %v102_v2 = vld [vmem:[%s207_s0 + $0xe] sm:$0x1]  }
   0x2   :  { %7 = vrot.lane.b32.xlu0 %v101_v0, %s131_s10  ;;  %19 = vrot.lane.b32.xlu1 %v103_v1, %s132_s11  ;;  %v104_v3 = vld [vmem:[%s207_s0 + $0xc] sm:$0x1]   ;;  %s133_s16 = smov 56   ;;  %s134_s17 = smov 48   ;;  %v105_v4 = vld [vmem:[%s207_s0 + $0xb] sm:$0x1]  }
   0x3   :  { %v106_v5 = vld [vmem:[%s207_s0 + $0xa] sm:$0x1]   ;;  %v2_v6 = vld [vmem:[%s207_s0] sm:$0x1]   ;;  %s135_s24 = smov 44   ;;  %s136_s25 = smov 40  }
   0x4   :  { %4 = vst.msk [vmem:[#allocation0] sm:$0x1] %vm3_vm0, %v2_v6   ;;  %v107_v7 = vld [vmem:[%s207_s0 + $0x9] sm:$0x1]   ;;  %v108_v8 = vld [vmem:[%s207_s0 + $0x8] sm:$0x1]  }
   0x5   :  { %s137_s30 = smov 36   ;;  %s138_s2 = smov 32   ;;  %v109_v9 = vld [vmem:[%s207_s0 + $0x7] sm:$0x1]   ;;  %v110_v10 = vld [vmem:[%s207_s0 + $0x6] sm:$0x1]  }
   0x6   :  { %13 = vrot.lane.b32.xlu0 %v102_v2, %s133_s16  ;;  %25 = vrot.lane.b32.xlu1 %v104_v3, %s134_s17  ;;  %s139_s7 = smov 28   ;;  %s140_s8 = smov 24   ;;  %v111_v11 = vld [vmem:[%s207_s0 + $0x5] sm:$0x1]   ;;  %v112_v12 = vld [vmem:[%s207_s0 + $0x4] sm:$0x1]  }
   0x7   :  { %s141_s13 = smov 20   ;;  %s142_s14 = smov 16   ;;  %v113_v13 = vld [vmem:[%s207_s0 + $0x3] sm:$0x1]   ;;  %v114_v14 = vld [vmem:[%s207_s0 + $0x2] sm:$0x1]  }
   0x8   :  { %s143_s19 = smov 12   ;;  %s144_s20 = smov 8   ;;  %v115_v15 = vld [vmem:[%s207_s0 + $0x1] sm:$0x1]   ;;  %vm27_vm4 = vcmask 425344   ;;  %vm33_vm5 = vcmask 392544  }
   0x9   :  { %s145_s0 = smov 4   ;;  %vm39_vm6 = vcmask 359744   ;;  %vm45_vm7 = vcmask 326944   ;;  %vm51_vm8 = vcmask 294144   ;;  %vm57_vm9 = vcmask 261344  }
   0xa   :  { %31 = vrot.lane.b32.xlu0 %v105_v4, %s135_s24  ;;  %37 = vrot.lane.b32.xlu1 %v106_v5, %s136_s25  ;;  %vm63_vm10 = vcmask 228544   ;;  %vm69_vm11 = vcmask 195744   ;;  %vm75_vm12 = vcmask 162944   ;;  %vm81_vm13 = vcmask 130144  }
   0xb   :  { %vm87_vm14 = vcmask 97344   ;;  %vm93_vm15 = vcmask 64544  }
   0xe   :  { %43 = vrot.lane.b32.xlu0 %v107_v7, %s137_s30  ;;  %49 = vrot.lane.b32.xlu1 %v108_v8, %s138_s2 }
  0x12   :  { %55 = vrot.lane.b32.xlu0 %v109_v9, %s139_s7  ;;  %61 = vrot.lane.b32.xlu1 %v110_v10, %s140_s8 }
  0x16   :  { %67 = vrot.lane.b32.xlu0 %v111_v11, %s141_s13  ;;  %73 = vrot.lane.b32.xlu1 %v112_v12, %s142_s14 }
  0x1a   :  { %79 = vrot.lane.b32.xlu0 %v113_v13, %s143_s19  ;;  %85 = vrot.lane.b32.xlu1 %v114_v14, %s144_s20 }
  0x1e   :  { %91 = vrot.lane.b32.xlu0 %v115_v15, %s145_s0 }
  0x74   :  { %v8_v16 = vpop.permute.xlu0 %7   ;;  %v20_v17 = vpop.permute.xlu1 %19  }
  0x75   :  { %10 = vst.msk [vmem:[#allocation0] sm:$0x1] %vm9_vm1, %v8_v16  }
  0x78   :  { %v14_v18 = vpop.permute.xlu0 %13   ;;  %v26_v19 = vpop.permute.xlu1 %25  }
  0x79   :  { %16 = vst.msk [vmem:[#allocation0] sm:$0x1] %vm15_vm2, %v14_v18  }
  0x7a   :  { %22 = vst.msk [vmem:[#allocation0] sm:$0x1] %vm21_vm3, %v20_v17  }
  0x7b   :  { %28 = vst.msk [vmem:[#allocation0] sm:$0x1] %vm27_vm4, %v26_v19  }
  0x7c   :  { %v32_v20 = vpop.permute.xlu0 %31   ;;  %v38_v21 = vpop.permute.xlu1 %37  }
  0x7d   :  { %34 = vst.msk [vmem:[#allocation0] sm:$0x1] %vm33_vm5, %v32_v20  }
  0x7e   :  { %40 = vst.msk [vmem:[#allocation0] sm:$0x1] %vm39_vm6, %v38_v21  }
  0x80   :  { %v44_v22 = vpop.permute.xlu0 %43   ;;  %v50_v23 = vpop.permute.xlu1 %49  }
  0x81   :  { %46 = vst.msk [vmem:[#allocation0] sm:$0x1] %vm45_vm7, %v44_v22  }
  0x82   :  { %52 = vst.msk [vmem:[#allocation0] sm:$0x1] %vm51_vm8, %v50_v23  }
  0x84   :  { %v56_v24 = vpop.permute.xlu0 %55   ;;  %v62_v25 = vpop.permute.xlu1 %61  }
  0x85   :  { %58 = vst.msk [vmem:[#allocation0] sm:$0x1] %vm57_vm9, %v56_v24  }
  0x86   :  { %64 = vst.msk [vmem:[#allocation0] sm:$0x1] %vm63_vm10, %v62_v25  }
  0x88   :  { %v68_v26 = vpop.permute.xlu0 %67   ;;  %v74_v27 = vpop.permute.xlu1 %73  }
  0x89   :  { %70 = vst.msk [vmem:[#allocation0] sm:$0x1] %vm69_vm11, %v68_v26  }
  0x8a   :  { %76 = vst.msk [vmem:[#allocation0] sm:$0x1] %vm75_vm12, %v74_v27  }
  0x8c   :  { %v80_v28 = vpop.permute.xlu0 %79   ;;  %v86_v29 = vpop.permute.xlu1 %85  }
  0x8d   :  { %82 = vst.msk [vmem:[#allocation0] sm:$0x1] %vm81_vm13, %v80_v28  }
  0x8e   :  { %88 = vst.msk [vmem:[#allocation0] sm:$0x1] %vm87_vm14, %v86_v29  }
  0x90   :  { %v92_v30 = vpop.permute.xlu0 %91  }
  0x91   :  { %94 = vst.msk [vmem:[#allocation0] sm:$0x1] %vm93_vm15, %v92_v30  }
  0x98   :  { %v98_v31 = vld [vmem:[#allocation0] sm:$0x1] }
  0x99   :  { %100 = vst [vmem:[%s208_s1] sm:$0x1] %v98_v31 }

// kernel: dqn_forward.1
= control target key start
LH: loop header
LB: loop body
LE: loop exit
PB: predicated region body
PF: predicated region fallthrough
CT: control target
= control target key end

     0   :  { %v523_v0 = vmov 0.0|0.0   ;;  %vm524_vm0 = vmmov 0   ;;  %v525_v4 = vmov 0.0   ;;  %s527_s17 = smov 112   ;;  %s530_s18 = smov 16   ;;  %vm257_vm1 = vcmask 130048   ;;  %s720_s1 = inlined_call_operand.vmem [shape: f32[128,128], index: 1, kind: input, shape index: {}]   ;;  %s721_s3 = inlined_call_operand.vmem [shape: f32[128,128], index: 3, kind: input, shape index: {}]   ;;  %s722_s0 = inlined_call_operand.vmem [shape: f32[1,128], index: 0, kind: input, shape index: {}]   ;;  %s723_s2 = inlined_call_operand.vmem [shape: f32[1,128], index: 2, kind: input, shape index: {}]   ;;  %s724_s4 = inlined_call_operand.vmem [shape: f32[1,128], index: 4, kind: input, shape index: {}]   ;;  %s725_s5 = inlined_call_operand.vmem [shape: f32[16,64], index: 5, kind: input, shape index: {}]   ;;  %s726_s6 = inlined_call_operand.vmem [shape: f32[1,64], index: 6, kind: output, shape index: {}]  }
   0x1   :  { %452 = vmatprep.subr.bf16.mxu0 %v523_v0  ;;  %v24_v1 = vld [vmem:[%s720_s1] sm:$0xff]  ;;  %v25_v2 = vld [vmem:[%s720_s1 + $0x8] sm:$0xff]  ;;  %v26_v3 = vld [vmem:[%s720_s1 + $0x10] sm:$0xff]  ;;  %407 = vmatprep.mubr.msk.f32.mxu0 %vm524_vm0, %v525_v4  ;;  %s531_s19 = smov 48   ;;  %s532_s24 = smov 64   ;;  %vm331_vm2 = vcmask 516096  }
   0x2   :  { %v453_v5 = vpack.c.bf16 %v25_v2, %v24_v1  ;;  %v27_v6 = vld [vmem:[%s720_s1 + $0x18] sm:$0xff]  ;;  %476 = vmatprep.subr.bf16.mxu1 %v523_v0  ;;  %442 = vmatprep.mubr.msk.f32.mxu1 %vm524_vm0, %v525_v4  ;;  %v28_v8 = vld [vmem:[%s720_s1 + $0x20] sm:$0xff]  ;;  %v29_v9 = vld [vmem:[%s720_s1 + $0x28] sm:$0xff] }
   0x3   :  { %v456_v7 = vpack.c.bf16 %v27_v6, %v26_v3  ;;  %v112_v10 = vld [vmem:[%s721_s3] sm:$0xff]  ;;  %v113_v11 = vld [vmem:[%s721_s3 + $0x8] sm:$0xff]  ;;  %v114_v12 = vld [vmem:[%s721_s3 + $0x10] sm:$0xff]  ;;  %v459_v14 = vpack.c.bf16 %v29_v9, %v28_v8 }
   0x4   :  { %454 = vmatpush3.bf16.msra.mxu0 %v453_v5  ;;  %v115_v13 = vld [vmem:[%s721_s3 + $0x18] sm:$0xff]  ;;  %v477_v15 = vpack.c.bf16 %v113_v11, %v112_v10  ;;  %v30_v16 = vld [vmem:[%s720_s1 + $0x30] sm:$0xff]  ;;  %v116_v19 = vld [vmem:[%s721_s3 + $0x20] sm:$0xff] }
   0x5   :  { %455 = vmatprep.subr.bf16.mxu0 %v523_v0  ;;  %v31_v17 = vld [vmem:[%s720_s1 + $0x38] sm:$0xff]  ;;  %v480_v18 = vpack.c.bf16 %v115_v13, %v114_v12  ;;  %v117_v20 = vld [vmem:[%s721_s3 + $0x28] sm:$0xff]  ;;  %v32_v22 = vld [vmem:[%s720_s1 + $0x40] sm:$0xff] }
   0x6   :  { %478 = vmatpush3.bf16.msra.mxu1 %v477_v15  ;;  %v462_v21 = vpack.c.bf16 %v31_v17, %v30_v16  ;;  %v33_v23 = vld [vmem:[%s720_s1 + $0x48] sm:$0xff]  ;;  %v483_v24 = vpack.c.bf16 %v117_v20, %v116_v19  ;;  %v118_v25 = vld [vmem:[%s721_s3 + $0x30] sm:$0xff]  ;;  %v119_v26 = vld [vmem:[%s721_s3 + $0x38] sm:$0xff] }
   0x7   :  { %479 = vmatprep.subr.bf16.mxu1 %v523_v0  ;;  %v465_v27 = vpack.c.bf16 %v33_v23, %v32_v22  ;;  %v34_v28 = vld [vmem:[%s720_s1 + $0x50] sm:$0xff]  ;;  %v35_v29 = vld [vmem:[%s720_s1 + $0x58] sm:$0xff]  ;;  %v486_v30 = vpack.c.bf16 %v119_v26, %v118_v25  ;;  %v120_v31 = vld [vmem:[%s721_s3 + $0x40] sm:$0xff] }
   0x8   :  { %457 = vmatpush3.bf16.msra.mxu0 %v456_v7  ;;  %v121_v32 = vld [vmem:[%s721_s3 + $0x48] sm:$0xff]  ;;  %v468_v33 = vpack.c.bf16 %v35_v29, %v34_v28  ;;  %v36_v34 = vld [vmem:[%s720_s1 + $0x60] sm:$0xff]  ;;  %v122_v37 = vld [vmem:[%s721_s3 + $0x50] sm:$0xff] }
   0x9   :  { %458 = vmatprep.subr.bf16.mxu0 %v523_v0  ;;  %v37_v35 = vld [vmem:[%s720_s1 + $0x68] sm:$0xff]  ;;  %v489_v36 = vpack.c.bf16 %v121_v32, %v120_v31  ;;  %v123_v38 = vld [vmem:[%s721_s3 + $0x58] sm:$0xff]  ;;  %v38_v40 = vld [vmem:[%s720_s1 + $0x70] sm:$0xff] }
   0xa   :  { %481 = vmatpush3.bf16.msra.mxu1 %v480_v18  ;;  %v471_v39 = vpack.c.bf16 %v37_v35, %v36_v34  ;;  %v39_v41 = vld [vmem:[%s720_s1 + $0x78] sm:$0xff]  ;;  %v492_v42 = vpack.c.bf16 %v123_v38, %v122_v37  ;;  %v124_v43 = vld [vmem:[%s721_s3 + $0x60] sm:$0xff]  ;;  %v125_v44 = vld [vmem:[%s721_s3 + $0x68] sm:$0xff] }
   0xb   :  { %482 = vmatprep.subr.bf16.mxu1 %v523_v0  ;;  %v474_v45 = vpack.c.bf16 %v39_v41, %v38_v40  ;;  %v495_v46 = vpack.c.bf16 %v125_v44, %v124_v43  ;;  %v23_v47 = vld [vmem:[%s722_s0] sm:$0x1]  ;;  %v126_v48 = vld [vmem:[%s721_s3 + $0x70] sm:$0xff]  ;;  %v127_v49 = vld [vmem:[%s721_s3 + $0x78] sm:$0xff]  ;;  %s526_s3 = smov 80  }
   0xc   :  { %460 = vmatpush3.bf16.msra.mxu0 %v459_v14  ;;  %v498_v50 = vpack.c.bf16 %v127_v49, %v126_v48  ;;  %v40_v51 = vld [vmem:[%s723_s2] sm:$0x1]  ;;  %s528_s2 = smov 96   ;;  %v253_v15 = vld [vmem:[%s725_s5 + $0x8] sm:$0xff] }
   0xd   :  { %461 = vmatprep.subr.bf16.mxu0 %v523_v0  ;;  %v128_v56 = vld [vmem:[%s724_s4] sm:$0x1]  ;;  %s529_s4 = smov 32  }
   0xe   :  { %484 = vmatpush3.bf16.msra.mxu1 %v483_v24  ;;  %v252_v14 = vld [vmem:[%s725_s5] sm:$0xff] }
   0xf   :  { %485 = vmatprep.subr.bf16.mxu1 %v523_v0  ;;  %v501_v16 = vpack.c.bf16 %v253_v15, %v252_v14 }
  0x10   :  { %463 = vmatpush3.bf16.msra.mxu0 %v462_v21 }
  0x11   :  { %464 = vmatprep.subr.bf16.mxu0 %v523_v0 }
  0x12   :  { %487 = vmatpush3.bf16.msra.mxu1 %v486_v30 }
  0x13   :  { %488 = vmatprep.subr.bf16.mxu1 %v523_v0 }
  0x14   :  { %466 = vmatpush3.bf16.msra.mxu0 %v465_v27 }
  0x15   :  { %467 = vmatprep.subr.bf16.mxu0 %v523_v0 }
  0x16   :  { %490 = vmatpush3.bf16.msra.mxu1 %v489_v36 }
  0x17   :  { %491 = vmatprep.subr.bf16.mxu1 %v523_v0 }
  0x18   :  { %469 = vmatpush3.bf16.msra.mxu0 %v468_v33 }
  0x19   :  { %470 = vmatprep.subr.bf16.mxu0 %v523_v0 }
  0x1a   :  { %493 = vmatpush3.bf16.msra.mxu1 %v492_v42 }
  0x1b   :  { %494 = vmatprep.subr.bf16.mxu1 %v523_v0 }
  0x1c   :  { %472 = vmatpush3.bf16.msra.mxu0 %v471_v39 }
  0x1d   :  { %473 = vmatprep.subr.bf16.mxu0 %v523_v0 }
  0x1e   :  { %496 = vmatpush3.bf16.msra.mxu1 %v495_v46 }
  0x1f   :  { %497 = vmatprep.subr.bf16.mxu1 %v523_v0 }
  0x20   :  { %475 = vmatpush3.bf16.msra.mxu0 %v474_v45 }
  0x21   :  { %500 = vmatprep.subr.bf16.mxu0 %v523_v0 }
  0x22   :  { %499 = vmatpush3.bf16.msra.mxu1 %v498_v50 }
  0x23   :  { %408 = vmatmul.mubr.f32.vlgmr.msra.gmra.mrb[0].mxu0 %v23_v47 }
  0x24   :  { %449 = vmatprep.mubr.msk.f32.mxu0 %vm524_vm0, %v525_v4  ;;  %502 = vmatpush3.bf16.msra.mxu0 %v501_v16 }
  0xf6   :  { %v107_v52 = vpop.f32.mrb[0].mxu0 }
  0xf7   :  { %v108_v53 = vadd.f32 %v107_v52, %v40_v51  ;;  %v409_v54 = vpop.f32.mrb[1].mxu0 }
  0xf9   :  { %v111_v55 = vmax.f32 %v108_v53, 0.0 }
  0xfb   :  { %443 = vmatmul.mubr.f32.vlgmr.msra.gmra.mrb[0].mxu1 %v111_v55 }
 0x1ce   :  { %v195_v57 = vpop.f32.mrb[0].mxu1 }
 0x1cf   :  { %v696_v58 = vadd.f32 %v195_v57, %v128_v56  ;;  %v444_v59 = vpop.f32.mrb[1].mxu1 }
 0x1d1   :  { %208 = vrot.lane.b32.xlu1 %v696_v58, %s526_s3  ;;  %200 = vrot.lane.b32.xlu0 %v696_v58, %s527_s17 }
 0x1d5   :  { %204 = vrot.lane.b32.xlu0 %v696_v58, %s528_s2 }
 0x243   :  { %v201_v60 = vpop.permute.xlu0 %200  ;;  %v209_v0 = vpop.permute.xlu1 %208 }
 0x244   :  { %v203_v61 = vmax.f32 %v696_v58, %v201_v60 }
 0x247   :  { %v205_v62 = vpop.permute.xlu0 %204 }
 0x248   :  { %v207_v63 = vmax.f32 %v203_v61, %v205_v62 }
 0x24a   :  { %v211_v1 = vmax.f32 %v207_v63, %v209_v0 }
 0x24c   :  { %222 = vrot.lane.b32.xlu0 %v211_v1, %s529_s4  ;;  %216 = vrot.lane.b32.xlu1 %v211_v1, %s530_s18  ;;  %v212_v17 = vsub.f32 %v696_v58, %v211_v1 }
 0x24e   :  { %v213_v18 = vmul.f32 1.442695, %v212_v17 }
 0x250   :  { %228 = vrot.lane.b32.xlu1 %v211_v1, %s531_s19 }
 0x2be   :  { %v223_v2 = vpop.permute.xlu0 %222  ;;  %v217_v3 = vpop.permute.xlu1 %216 }
 0x2bf   :  { %v225_v4 = vsub.f32 %v696_v58, %v223_v2  ;;  %v219_v5 = vsub.f32 %v696_v58, %v217_v3 }
 0x2c1   :  { %v226_v6 = vmul.f32 1.442695, %v225_v4  ;;  %v220_v7 = vmul.f32 1.442695, %v219_v5 }
 0x2c2   :  { %v229_v8 = vpop.permute.xlu1 %228 }
 0x2c3   :  { %513 = vpow2.f32 %v226_v6  ;;  %v231_v9 = vsub.f32 %v696_v58, %v229_v8 }
 0x2c4   :  { %515 = vpow2.f32 %v220_v7 }
 0x2c5   :  { %v232_v10 = vmul.f32 1.442695, %v231_v9 }
 0x2c7   :  { %517 = vpow2.f32 %v232_v10 }
 0x2c8   :  { %519 = vpow2.f32 %v213_v18 }
 0x2cd   :  { %v514_v11 = vpop.eup %513 }
 0x2ce   :  { %v516_v12 = vpop.eup %515  ;;  %240 = vrot.lane.b32.xlu1 %v514_v11, %s528_s2 }
 0x2cf   :  { %235 = vrot.lane.b32.xlu0 %v516_v12, %s527_s17 }
 0x2d1   :  { %v518_v13 = vpop.eup %517 }
 0x2d2   :  { %v520_v19 = vpop.eup %519 }
 0x2d3   :  { %245 = vrot.lane.b32.xlu0 %v518_v13, %s526_s3 }
 0x340   :  { %v241_v22 = vpop.permute.xlu1 %240 }
 0x341   :  { %v236_v20 = vpop.permute.xlu0 %235 }
 0x342   :  { %v238_v21 = vadd.f32 %v520_v19, %v236_v20 }
 0x344   :  { %v243_v23 = vadd.f32 %v241_v22, %v238_v21 }
 0x345   :  { %v246_v24 = vpop.permute.xlu0 %245 }
 0x346   :  { %v248_v25 = vadd.f32 %v246_v24, %v243_v23 }
 0x348   :  { %521 = vlog2.f32 %v248_v25 }
 0x352   :  { %v522_v26 = vpop.eup %521 }
 0x353   :  { %v250_v27 = vmul.f32 0.6931472, %v522_v26 }
 0x355   :  { %v251_v28 = vadd.f32 %v250_v27, %v211_v1 }
 0x357   :  { %255 = vrot.lane.b32.xlu1 %v251_v28, %s532_s24 }
 0x3c9   :  { %v256_v29 = vpop.permute.xlu1 %255 }
 0x3ca   :  { %450 = vmatmul.mubr.msk.f32.vlgmr.msra.gmra.mrb[2].mxu0 %vm257_vm1, %v256_v29 }
 0x49d   :  { %v326_v30 = vpop.f32.mrb[2].mxu0 }
 0x49e   :  { %v330_v31 = vsub.f32 %v696_v58, %v326_v30  ;;  %v451_v32 = vpop.f32.mrb[3].mxu0 }
 0x4a0   :  { %332 = vst.msk [vmem:[%s726_s6] sm:$0x1] %vm331_vm2, %v330_v31 }

</bundles_post_ra>
